<compile_context>
chip_gen: v6e
topology: v6e:2x2x1
jax: 0.10.0
libtpu: 0.0.40
codegen_flags: <defaults>
</compile_context>

<pallas_src>
import jax
import jax.numpy as jnp
from jax.experimental import pallas as pl
from jax.experimental.pallas import tpu as pltpu

HIDDEN = 32
NUM_OUTPUTS = 8
LAYER_NORM_EPS = 1e-12
LANES = 128


def _round_up(x, m):
    return (x + m - 1) // m * m


def _make_mlm_kernel(eps):
    def kernel(x_ref, w1_ref, b1_ref, m_ref, w2_ref, b2_ref, o_ref):
        # x_ref: (tm_p, P*H)  w1: (P*H, P*H)  b1: (1, P*H)
        # m_ref: (P*H, P*H) block-diag averaging matrix
        # w2:    (P*H, P*O)  b2: (1, P*O)    o_ref: (tm_p, P*O)
        x = x_ref[...].astype(jnp.float32)

        # Linear(H, H) + ReLU, applied to P packed rows at once (block-diag W1).
        h = jnp.dot(x, w1_ref[...], preferred_element_type=jnp.float32) + b1_ref[...]
        h = jnp.maximum(h, 0.0)

        # LayerNorm per 32-lane segment (biased variance, like nn.LayerNorm).
        # mean/var are computed with block-diag averaging matmuls (MXU, not XLU),
        # and come out already broadcast across each segment's lanes.
        mean = jnp.dot(h, m_ref[...], preferred_element_type=jnp.float32)
        c = h - mean
        var = jnp.dot(c * c, m_ref[...], preferred_element_type=jnp.float32)
        hn = c * jax.lax.rsqrt(var + eps)

        # Linear(H, O) with the LayerNorm affine pre-folded in (block-diag W2').
        out = jnp.dot(hn, w2_ref[...], preferred_element_type=jnp.float32) + b2_ref[...]
        o_ref[...] = out.astype(o_ref.dtype)

    return kernel


def mlm_classifier_forward(x, w1, b1, gamma, beta, w2, b2, *,
                           layer_norm_eps=LAYER_NORM_EPS, tm=8192):
    """Forward pass of `mlm_classifier`.

    x:     (B, S, H) float32
    w1:    (H, H) PyTorch layout (out_features, in_features);  b1: (H,)
    gamma: (H,) LayerNorm weight;                              beta: (H,)
    w2:    (O, H) PyTorch layout (out_features, in_features);  b2: (O,)
    returns (B, S, O)
    """
    B, S, H = x.shape
    O = w2.shape[0]
    N = B * S

    # Lane-packing factor: P rows share one 128-lane vreg row.
    P = LANES // H if LANES % H == 0 else 1

    # One-time (tiny) parameter prep done in the wrapper:
    #  - transpose to (in, out) layout,
    #  - fold LayerNorm affine into the second linear,
    #  - build block-diagonal packed weights with kron(eye(P), .).
    w1_t = jnp.asarray(w1, jnp.float32).T                        # (H, H)
    b1_v = jnp.asarray(b1, jnp.float32)                          # (H,)
    w2_t = jnp.asarray(w2, jnp.float32).T                        # (H, O)
    g = jnp.asarray(gamma, jnp.float32)
    bt = jnp.asarray(beta, jnp.float32)
    w2_eff = g[:, None] * w2_t                                   # (H, O)
    b2_eff = bt @ w2_t + jnp.asarray(b2, jnp.float32)            # (O,)

    eye_p = jnp.eye(P, dtype=jnp.float32)
    w1_blk = jnp.kron(eye_p, w1_t)                               # (P*H, P*H)
    m_blk = jnp.kron(eye_p, jnp.full((H, H), 1.0 / H, jnp.float32))
    w2_blk = jnp.kron(eye_p, w2_eff)                             # (P*H, P*O)
    b1_blk = jnp.tile(b1_v, P).reshape(1, P * H)
    b2_blk = jnp.tile(b2_eff, P).reshape(1, P * O)

    # Row tiling: split rows into grid steps of ~tm original rows each, balanced and
    # rounded to a multiple of 8*P so the packed block keeps 8-sublane alignment.
    num_steps = max(1, (N + tm - 1) // tm)
    tm_eff = _round_up(-(-N // num_steps), 8 * P)                # original rows / step
    n_pad = tm_eff * num_steps
    tm_pack = tm_eff // P
    n_pack = n_pad // P

    x2d = x.reshape(N, H)
    if n_pad != N:
        x2d = jnp.pad(x2d, ((0, n_pad - N), (0, 0)))
    x_packed = x2d.reshape(n_pack, P * H)                        # zero-cost reshape

    # Advisory cost estimate for XLA scheduling.
    HP, OP = P * H, P * O
    flops = n_pack * (3 * 2 * HP * HP + 2 * HP * OP + 8 * HP)
    bytes_accessed = 4 * (n_pack * (HP + OP) + 2 * HP * HP + HP * OP + HP + OP)
    cost = pl.CostEstimate(flops=flops, transcendentals=n_pack * HP,
                           bytes_accessed=bytes_accessed)

    out_packed = pl.pallas_call(
        _make_mlm_kernel(float(layer_norm_eps)),
        out_shape=jax.ShapeDtypeStruct((n_pack, OP), x.dtype),
        grid_spec=pltpu.PrefetchScalarGridSpec(
            num_scalar_prefetch=0,
            grid=(n_pack // tm_pack,),
            in_specs=[
                pl.BlockSpec((tm_pack, HP), lambda i: (i, 0)),   # packed x rows
                pl.BlockSpec((HP, HP), lambda i: (0, 0)),        # block-diag W1
                pl.BlockSpec((1, HP), lambda i: (0, 0)),         # tiled b1
                pl.BlockSpec((HP, HP), lambda i: (0, 0)),        # block-diag mean matrix
                pl.BlockSpec((HP, OP), lambda i: (0, 0)),        # block-diag W2' (gamma folded)
                pl.BlockSpec((1, OP), lambda i: (0, 0)),         # tiled b2' (beta folded)
            ],
            out_specs=pl.BlockSpec((tm_pack, OP), lambda i: (i, 0)),
        ),
        compiler_params=pltpu.CompilerParams(
            dimension_semantics=("parallel",)),
        cost_estimate=cost,
    )(x_packed, w1_blk, b1_blk, m_blk, w2_blk, b2_blk)

    out2d = out_packed.reshape(n_pad, O)                         # zero-cost reshape
    if n_pad != N:
        out2d = out2d[:N]
    return out2d.reshape(B, S, O)


def _reference(x2d, w1, b1, gamma, beta, w2, b2, eps):
    h = x2d @ w1.T + b1
    h = jnp.maximum(h, 0.0)
    mean = jnp.mean(h, axis=-1, keepdims=True)
    var = jnp.mean((h - mean) ** 2, axis=-1, keepdims=True)
    hn = (h - mean) / jnp.sqrt(var + eps)
    hn = hn * gamma + beta
    return hn @ w2.T + b2


if __name__ == "__main__":
    key = jax.random.PRNGKey(0)
    kx, k1, k2, k3, k4, k5, k6 = jax.random.split(key, 7)

    B, S, H, O = 2, 8, HIDDEN, NUM_OUTPUTS

    x = jax.random.normal(kx, (B, S, H), dtype=jnp.float32)

    # Deterministic synthetic parameters in PyTorch layout (out_features, in_features).
    w1 = jax.random.normal(k1, (H, H), dtype=jnp.float32) * 0.05
    b1 = jax.random.normal(k2, (H,), dtype=jnp.float32) * 0.01
    gamma = 1.0 + 0.1 * jax.random.normal(k5, (H,), dtype=jnp.float32)
    beta = 0.05 * jax.random.normal(k6, (H,), dtype=jnp.float32)
    w2 = jax.random.normal(k3, (O, H), dtype=jnp.float32) * 0.05
    b2 = jax.random.normal(k4, (O,), dtype=jnp.float32) * 0.01

    out = mlm_classifier_forward(x, w1, b1, gamma, beta, w2, b2)
    out = jax.block_until_ready(out)

    ref = _reference(x.reshape(B * S, H), w1, b1, gamma, beta, w2, b2,
                     LAYER_NORM_EPS).reshape(B, S, O)
    assert out.shape == (B, S, O)
    assert jnp.allclose(out, ref, atol=1e-5, rtol=1e-5)

    print("KERNEL_OK")
</pallas_src>

<mosaic_0001>
module attributes {stable_mosaic.version = 11 : i64} {
  func.func @kernel(%arg0: i32, %arg1: memref<8x128xf32, #tpu.memory_space<vmem>>, %arg2: memref<128x128xf32, #tpu.memory_space<vmem>>, %arg3: memref<1x128xf32, #tpu.memory_space<vmem>>, %arg4: memref<128x128xf32, #tpu.memory_space<vmem>>, %arg5: memref<128x32xf32, #tpu.memory_space<vmem>>, %arg6: memref<1x32xf32, #tpu.memory_space<vmem>>, %arg7: memref<8x32xf32, #tpu.memory_space<vmem>>) attributes {dimension_semantics = [#tpu.dimension_semantics<parallel>], iteration_bounds = array<i64: 1>, scalar_prefetch = 0 : i64, scratch_operands = 0 : i64, tpu.core_type = #tpu.core_type<tc>, window_params = [{transform_indices = @transform_0, window_bounds = array<i64: 8, 128>}, {pipeline_mode = #tpu.pipeline_mode<synchronous>, transform_indices = @transform_1, window_bounds = array<i64: 128, 128>}, {pipeline_mode = #tpu.pipeline_mode<synchronous>, transform_indices = @transform_2, window_bounds = array<i64: 1, 128>}, {pipeline_mode = #tpu.pipeline_mode<synchronous>, transform_indices = @transform_3, window_bounds = array<i64: 128, 128>}, {pipeline_mode = #tpu.pipeline_mode<synchronous>, transform_indices = @transform_4, window_bounds = array<i64: 128, 32>}, {pipeline_mode = #tpu.pipeline_mode<synchronous>, transform_indices = @transform_5, window_bounds = array<i64: 1, 32>}, {transform_indices = @transform_6, window_bounds = array<i64: 8, 32>}]} {
    %c0 = arith.constant 0 : index
    %c0_0 = arith.constant 0 : index
    %0 = vector.load %arg1[%c0, %c0_0] : memref<8x128xf32, #tpu.memory_space<vmem>>, vector<8x128xf32>
    %c0_1 = arith.constant 0 : index
    %c0_2 = arith.constant 0 : index
    %1 = vector.load %arg2[%c0_1, %c0_2] : memref<128x128xf32, #tpu.memory_space<vmem>>, vector<128x128xf32>
    %cst = arith.constant dense<0.000000e+00> : vector<8x128xf32>
    %2 = tpu.matmul %0, %1, %cst {dimension_numbers = #tpu.dot_dimension_numbers<[1], [0], [0], [1], [0, 0, 1, 1], [], []>} : vector<8x128xf32>, vector<128x128xf32>, vector<8x128xf32> -> vector<8x128xf32>
    %c0_3 = arith.constant 0 : index
    %c0_4 = arith.constant 0 : index
    %3 = vector.load %arg3[%c0_3, %c0_4] : memref<1x128xf32, #tpu.memory_space<vmem>>, vector<1x128xf32>
    %4 = vector.broadcast %3 : vector<1x128xf32> to vector<8x128xf32>
    %5 = arith.addf %2, %4 : vector<8x128xf32>
    %cst_5 = arith.constant 0.000000e+00 : f32
    %6 = vector.broadcast %cst_5 : f32 to vector<8x128xf32>
    %7 = arith.maximumf %5, %6 : vector<8x128xf32>
    %c0_6 = arith.constant 0 : index
    %c0_7 = arith.constant 0 : index
    %8 = vector.load %arg4[%c0_6, %c0_7] : memref<128x128xf32, #tpu.memory_space<vmem>>, vector<128x128xf32>
    %cst_8 = arith.constant dense<0.000000e+00> : vector<8x128xf32>
    %9 = tpu.matmul %7, %8, %cst_8 {dimension_numbers = #tpu.dot_dimension_numbers<[1], [0], [0], [1], [0, 0, 1, 1], [], []>} : vector<8x128xf32>, vector<128x128xf32>, vector<8x128xf32> -> vector<8x128xf32>
    %10 = arith.subf %7, %9 : vector<8x128xf32>
    %11 = arith.mulf %10, %10 : vector<8x128xf32>
    %c0_9 = arith.constant 0 : index
    %c0_10 = arith.constant 0 : index
    %12 = vector.load %arg4[%c0_9, %c0_10] : memref<128x128xf32, #tpu.memory_space<vmem>>, vector<128x128xf32>
    %cst_11 = arith.constant dense<0.000000e+00> : vector<8x128xf32>
    %13 = tpu.matmul %11, %12, %cst_11 {dimension_numbers = #tpu.dot_dimension_numbers<[1], [0], [0], [1], [0, 0, 1, 1], [], []>} : vector<8x128xf32>, vector<128x128xf32>, vector<8x128xf32> -> vector<8x128xf32>
    %cst_12 = arith.constant 9.99999996E-13 : f32
    %14 = vector.broadcast %cst_12 : f32 to vector<8x128xf32>
    %15 = arith.addf %13, %14 : vector<8x128xf32>
    %16 = math.rsqrt %15 : vector<8x128xf32>
    %17 = arith.mulf %10, %16 : vector<8x128xf32>
    %c0_13 = arith.constant 0 : index
    %c0_14 = arith.constant 0 : index
    %18 = vector.load %arg5[%c0_13, %c0_14] : memref<128x32xf32, #tpu.memory_space<vmem>>, vector<128x32xf32>
    %cst_15 = arith.constant dense<0.000000e+00> : vector<8x32xf32>
    %19 = tpu.matmul %17, %18, %cst_15 {dimension_numbers = #tpu.dot_dimension_numbers<[1], [0], [0], [1], [0, 0, 1, 1], [], []>} : vector<8x128xf32>, vector<128x32xf32>, vector<8x32xf32> -> vector<8x32xf32>
    %c0_16 = arith.constant 0 : index
    %c0_17 = arith.constant 0 : index
    %20 = vector.load %arg6[%c0_16, %c0_17] : memref<1x32xf32, #tpu.memory_space<vmem>>, vector<1x32xf32>
    %21 = vector.broadcast %20 : vector<1x32xf32> to vector<8x32xf32>
    %22 = arith.addf %19, %21 : vector<8x32xf32>
    %c0_18 = arith.constant 0 : index
    %c0_19 = arith.constant 0 : index
    %23 = vector.load %arg7[%c0_18, %c0_19] : memref<8x32xf32, #tpu.memory_space<vmem>>, vector<8x32xf32>
    tpu.vector_store %arg7[%c0_18, %c0_19], %22 {strides = array<i32>} : memref<8x32xf32, #tpu.memory_space<vmem>>, vector<8x32xf32>,
    return
  }
  func.func @transform_0(%arg0: i32) -> (i32, i32) {
    %c0_i32 = arith.constant 0 : i32
    %c0_i32_0 = arith.constant 0 : i32
    return %arg0, %c0_i32 : i32, i32
  }
  func.func @transform_1(%arg0: i32) -> (i32, i32) {
    %c0_i32 = arith.constant 0 : i32
    %c0_i32_0 = arith.constant 0 : i32
    %c0_i32_1 = arith.constant 0 : i32
    return %c0_i32, %c0_i32_0 : i32, i32
  }
  func.func @transform_2(%arg0: i32) -> (i32, i32) {
    %c0_i32 = arith.constant 0 : i32
    %c0_i32_0 = arith.constant 0 : i32
    %c0_i32_1 = arith.constant 0 : i32
    return %c0_i32, %c0_i32_0 : i32, i32
  }
  func.func @transform_3(%arg0: i32) -> (i32, i32) {
    %c0_i32 = arith.constant 0 : i32
    %c0_i32_0 = arith.constant 0 : i32
    %c0_i32_1 = arith.constant 0 : i32
    return %c0_i32, %c0_i32_0 : i32, i32
  }
  func.func @transform_4(%arg0: i32) -> (i32, i32) {
    %c0_i32 = arith.constant 0 : i32
    %c0_i32_0 = arith.constant 0 : i32
    %c0_i32_1 = arith.constant 0 : i32
    return %c0_i32, %c0_i32_0 : i32, i32
  }
  func.func @transform_5(%arg0: i32) -> (i32, i32) {
    %c0_i32 = arith.constant 0 : i32
    %c0_i32_0 = arith.constant 0 : i32
    %c0_i32_1 = arith.constant 0 : i32
    return %c0_i32, %c0_i32_0 : i32, i32
  }
  func.func @transform_6(%arg0: i32) -> (i32, i32) {
    %c0_i32 = arith.constant 0 : i32
    %c0_i32_0 = arith.constant 0 : i32
    return %arg0, %c0_i32 : i32, i32
  }
}

</mosaic_0001>

<bundles_post_ra>
// kernel: tpu_custom_call.1
= control target key start
LH: loop header
LB: loop body
LE: loop exit
PB: predicated region body
PF: predicated region fallthrough
CT: control target
= control target key end

     0   :  { %11 = vsyncpa [#allocation3], 0  ;;  %s913_s0 = inlined_call_operand.vmem [shape: f32[8,128], index: 0, kind: input, shape index: {}]   ;;  %s914_s1 = inlined_call_operand.vmem [shape: f32[128,128], index: 1, kind: input, shape index: {}]   ;;  %s915_s2 = inlined_call_operand.vmem [shape: f32[1,128], index: 2, kind: input, shape index: {}]   ;;  %s916_s3 = inlined_call_operand.hbm [shape: f32[128,128], index: 3, kind: input, shape index: {}]   ;;  %s917_s4 = inlined_call_operand.vmem [shape: f32[128,32], index: 4, kind: input, shape index: {}]   ;;  %s918_s5 = inlined_call_operand.vmem [shape: f32[1,32], index: 5, kind: input, shape index: {}]   ;;  %s919_s6 = inlined_call_operand.hbm [shape: f32[8,32], index: 6, kind: output, shape index: {}]  }
   0x1   :  { %12 = vsyncpa [#allocation4], 0  ;;  %s665_s21 = smov [#allocation2]  }
   0x2   :  { %s24_s22 = sshll.u32 %s665_s21, 4  ;;  %s25_s22 = int_to_ptr.vmem [resolvable:$true] %s24_s22 }
   0x3   :  { %s629_s23 = scalar_lea.vmem %s25_s22, 2048  ;;  %p634_p1 = scmp.lt.s32.totalorder %s25_s22, %s25_s22 }
   0x4   :  { %p630_p0 = scmp.ne.s32.totalorder %s25_s22, %s629_s23  ;;  %p635_p2 = scmp.lt.s32.totalorder %s629_s23, %s629_s23 }
   0x6   :  { %p636_p3 = por %p635_p2, %p634_p1 }
   0x8   :  { %p637_p4 = pnand %p636_p3, %p630_p0 }
   0xa   :  { %640 = shalt.err (!%p637_p4)
}
   0xb   :  { %s666_s24 = smov 128   ;;  %s667_s25 = smov 8  }
   0xc   :  { %30 = dma.hbm_to_vmem [thread:$0]  %s916_s3, 2048, %s25_s22, [#allocation3], %s666_s24, %s666_s24, %s667_s25  }
   0xd   :  { %661 = dma.done.wait [#allocation3], 2048  }
   0xe   :  { %662 = vsyncadd [#allocation3], 4294965248  ;;  %v668_v0 = vmov 0.0   ;;  %vm669_vm0 = vmmov 0   ;;  %v54_v1 = vld [vmem:[%s914_s1 + $0x78] sm:$0xff]  ;;  %v53_v2 = vld [vmem:[%s914_s1 + $0x70] sm:$0xff] }
   0xf   :  { %473 = vmatprep.subr.mxu0 %v668_v0  ;;  %505 = vmatprep.mubr.msk.f32.mxu0 %vm669_vm0, %v668_v0  ;;  %v52_v3 = vld [vmem:[%s914_s1 + $0x68] sm:$0xff]  ;;  %v51_v4 = vld [vmem:[%s914_s1 + $0x60] sm:$0xff]  ;;  %v729_v5 = vld [vmem:[#allocation2 + $0x78] sm:$0xff]  ;;  %s670_s17 = smov [#allocation5]   ;;  %vm386_vm1 = vcmask 261120  }
  0x10   :  { %508 = vmatprep.subr.mxu1 %v668_v0  ;;  %540 = vmatprep.mubr.msk.f32.mxu1 %vm669_vm0, %v668_v0  ;;  %v50_v6 = vld [vmem:[%s914_s1 + $0x58] sm:$0xff]  ;;  %v736_v7 = vld [vmem:[#allocation2 + $0x70] sm:$0xff]  ;;  %v739_v8 = vld [vmem:[#allocation2 + $0x68] sm:$0xff]  ;;  %s394_s18 = sshll.u32 %s670_s17, 4  ;;  %s395_s18 = int_to_ptr.vmem [resolvable:$true] %s394_s18 }
  0x11   :  { %474 = vmatpush3.msra.mxu0 %v54_v1  ;;  %509 = vmatpush3.msra.mxu1 %v729_v5  ;;  %v49_v9 = vld [vmem:[%s914_s1 + $0x50] sm:$0xff]  ;;  %v747_v10 = vld [vmem:[#allocation2 + $0x60] sm:$0xff]  ;;  %v48_v11 = vld [vmem:[%s914_s1 + $0x48] sm:$0xff]  ;;  %p646_p6 = scmp.lt.s32.totalorder %s395_s18, %s395_s18 }
  0x12   :  { %475 = vmatprep.subr.mxu0 %v668_v0  ;;  %510 = vmatprep.subr.mxu1 %v668_v0  ;;  %v755_v12 = vld [vmem:[#allocation2 + $0x58] sm:$0xff]  ;;  %v47_v13 = vld [vmem:[%s914_s1 + $0x40] sm:$0xff]  ;;  %v763_v14 = vld [vmem:[#allocation2 + $0x50] sm:$0xff] }
  0x13   :  { %476 = vmatpush3.msra.mxu0 %v53_v2  ;;  %511 = vmatpush3.msra.mxu1 %v736_v7  ;;  %v46_v15 = vld [vmem:[%s914_s1 + $0x38] sm:$0xff]  ;;  %v142_v16 = vld [vmem:[#allocation2 + $0x48] sm:$0xff]  ;;  %v45_v17 = vld [vmem:[%s914_s1 + $0x30] sm:$0xff] }
  0x14   :  { %477 = vmatprep.subr.mxu0 %v668_v0  ;;  %512 = vmatprep.subr.mxu1 %v668_v0  ;;  %v141_v18 = vld [vmem:[#allocation2 + $0x40] sm:$0xff]  ;;  %v44_v19 = vld [vmem:[%s914_s1 + $0x28] sm:$0xff]  ;;  %v140_v20 = vld [vmem:[#allocation2 + $0x38] sm:$0xff] }
  0x15   :  { %478 = vmatpush3.msra.mxu0 %v52_v3  ;;  %513 = vmatpush3.msra.mxu1 %v739_v8  ;;  %v43_v21 = vld [vmem:[%s914_s1 + $0x20] sm:$0xff]  ;;  %v139_v22 = vld [vmem:[#allocation2 + $0x30] sm:$0xff]  ;;  %v42_v23 = vld [vmem:[%s914_s1 + $0x18] sm:$0xff] }
  0x16   :  { %479 = vmatprep.subr.mxu0 %v668_v0  ;;  %514 = vmatprep.subr.mxu1 %v668_v0  ;;  %v138_v24 = vld [vmem:[#allocation2 + $0x28] sm:$0xff]  ;;  %v41_v25 = vld [vmem:[%s914_s1 + $0x10] sm:$0xff]  ;;  %v137_v26 = vld [vmem:[#allocation2 + $0x20] sm:$0xff] }
  0x17   :  { %480 = vmatpush3.msra.mxu0 %v51_v4  ;;  %515 = vmatpush3.msra.mxu1 %v747_v10  ;;  %v40_v27 = vld [vmem:[%s914_s1 + $0x8] sm:$0xff]  ;;  %v136_v28 = vld [vmem:[#allocation2 + $0x18] sm:$0xff]  ;;  %v39_v29 = vld [vmem:[%s914_s1] sm:$0xff] }
  0x18   :  { %481 = vmatprep.subr.mxu0 %v668_v0  ;;  %516 = vmatprep.subr.mxu1 %v668_v0  ;;  %v38_v30 = vld [vmem:[%s913_s0] sm:$0xff]  ;;  %v135_v31 = vld [vmem:[#allocation2 + $0x10] sm:$0xff]  ;;  %v134_v32 = vld [vmem:[#allocation2 + $0x8] sm:$0xff] }
  0x19   :  { %482 = vmatpush3.msra.mxu0 %v50_v6  ;;  %517 = vmatpush3.msra.mxu1 %v755_v12  ;;  %v133_v33 = vld [vmem:[#allocation2] sm:$0xff]  ;;  %v308_v39 = vld [vmem:[%s917_s4 + $0x78] sm:$0xff]  ;;  %v307_v40 = vld [vmem:[%s917_s4 + $0x70] sm:$0xff] }
  0x1a   :  { %483 = vmatprep.subr.mxu0 %v668_v0  ;;  %518 = vmatprep.subr.mxu1 %v668_v0  ;;  %v403_v34 = vld [vmem:[%s915_s2] ss:$0 sm:$0xff]  ;;  %v306_v41 = vld [vmem:[%s917_s4 + $0x68] sm:$0xff]  ;;  %v304_v43 = vld [vmem:[%s917_s4 + $0x58] sm:$0xff] }
  0x1b   :  { %484 = vmatpush3.msra.mxu0 %v49_v9  ;;  %519 = vmatpush3.msra.mxu1 %v763_v14  ;;  %v305_v42 = vld [vmem:[%s917_s4 + $0x60] sm:$0xff]  ;;  %v303_v44 = vld [vmem:[%s917_s4 + $0x50] sm:$0xff]  ;;  %v302_v49 = vld [vmem:[%s917_s4 + $0x48] sm:$0xff] }
  0x1c   :  { %485 = vmatprep.subr.mxu0 %v668_v0  ;;  %520 = vmatprep.subr.mxu1 %v668_v0  ;;  %v301_v50 = vld [vmem:[%s917_s4 + $0x40] sm:$0xff]  ;;  %v300_v51 = vld [vmem:[%s917_s4 + $0x38] sm:$0xff]  ;;  %v299_v52 = vld [vmem:[%s917_s4 + $0x30] sm:$0xff] }
  0x1d   :  { %486 = vmatpush3.msra.mxu0 %v48_v11  ;;  %521 = vmatpush3.msra.mxu1 %v142_v16  ;;  %v298_v53 = vld [vmem:[%s917_s4 + $0x28] sm:$0xff]  ;;  %v297_v54 = vld [vmem:[%s917_s4 + $0x20] sm:$0xff]  ;;  %v296_v55 = vld [vmem:[%s917_s4 + $0x18] sm:$0xff] }
  0x1e   :  { %487 = vmatprep.subr.mxu0 %v668_v0  ;;  %522 = vmatprep.subr.mxu1 %v668_v0  ;;  %v295_v56 = vld [vmem:[%s917_s4 + $0x10] sm:$0xff]  ;;  %v294_v57 = vld [vmem:[%s917_s4 + $0x8] sm:$0xff]  ;;  %v293_v58 = vld [vmem:[%s917_s4] sm:$0xff]  ;;  %s641_s4 = scalar_lea.vmem %s395_s18, 128 }
  0x1f   :  { %488 = vmatpush3.msra.mxu0 %v47_v13  ;;  %523 = vmatpush3.msra.mxu1 %v141_v18  ;;  %v404_v1 = vld [vmem:[%s918_s5] ss:$0 sm:$0xff]  ;;  %p642_p5 = scmp.ne.s32.totalorder %s395_s18, %s641_s4  ;;  %p647_p7 = scmp.lt.s32.totalorder %s641_s4, %s641_s4 }
  0x20   :  { %489 = vmatprep.subr.mxu0 %v668_v0  ;;  %524 = vmatprep.subr.mxu1 %v668_v0 }
  0x21   :  { %490 = vmatpush3.msra.mxu0 %v46_v15  ;;  %525 = vmatpush3.msra.mxu1 %v140_v20  ;;  %p648_p8 = por %p647_p7, %p646_p6 }
  0x22   :  { %491 = vmatprep.subr.mxu0 %v668_v0  ;;  %526 = vmatprep.subr.mxu1 %v668_v0 }
  0x23   :  { %492 = vmatpush3.msra.mxu0 %v45_v17  ;;  %527 = vmatpush3.msra.mxu1 %v139_v22  ;;  %p649_p9 = pnand %p648_p8, %p642_p5 }
  0x24   :  { %493 = vmatprep.subr.mxu0 %v668_v0  ;;  %528 = vmatprep.subr.mxu1 %v668_v0 }
  0x25   :  { %494 = vmatpush3.msra.mxu0 %v44_v19  ;;  %529 = vmatpush3.msra.mxu1 %v138_v24 }
  0x26   :  { %495 = vmatprep.subr.mxu0 %v668_v0  ;;  %530 = vmatprep.subr.mxu1 %v668_v0 }
  0x27   :  { %496 = vmatpush3.msra.mxu0 %v43_v21  ;;  %531 = vmatpush3.msra.mxu1 %v137_v26 }
  0x28   :  { %497 = vmatprep.subr.mxu0 %v668_v0  ;;  %532 = vmatprep.subr.mxu1 %v668_v0 }
  0x29   :  { %498 = vmatpush3.msra.mxu0 %v42_v23  ;;  %533 = vmatpush3.msra.mxu1 %v136_v28 }
  0x2a   :  { %499 = vmatprep.subr.mxu0 %v668_v0  ;;  %534 = vmatprep.subr.mxu1 %v668_v0 }
  0x2b   :  { %500 = vmatpush3.msra.mxu0 %v41_v25  ;;  %535 = vmatpush3.msra.mxu1 %v135_v31 }
  0x2c   :  { %501 = vmatprep.subr.mxu0 %v668_v0  ;;  %536 = vmatprep.subr.mxu1 %v668_v0 }
  0x2d   :  { %502 = vmatpush3.msra.mxu0 %v40_v27  ;;  %537 = vmatpush3.msra.mxu1 %v134_v32 }
  0x2e   :  { %503 = vmatprep.subr.mxu0 %v668_v0  ;;  %538 = vmatprep.subr.mxu1 %v668_v0 }
  0x2f   :  { %504 = vmatpush3.msra.mxu0 %v39_v29  ;;  %539 = vmatpush3.msra.mxu1 %v133_v33 }
  0x30   :  { %506 = vmatmul.mubr.f32.vlgmr.msra.gmra.mxu0 %v38_v30  ;;  %543 = vmatprep.subr.mxu0 %v668_v0 }
  0x31   :  { %544 = vmatpush3.msra.mxu0 %v729_v5  ;;  %575 = vmatprep.mubr.msk.f32.mxu0 %vm669_vm0, %v668_v0 }
  0x32   :  { %545 = vmatprep.subr.mxu0 %v668_v0  ;;  %578 = vmatprep.subr.mxu1 %v668_v0 }
  0x33   :  { %546 = vmatpush3.msra.mxu0 %v736_v7 }
  0x34   :  { %547 = vmatprep.subr.mxu0 %v668_v0 }
  0x35   :  { %548 = vmatpush3.msra.mxu0 %v739_v8 }
  0x36   :  { %549 = vmatprep.subr.mxu0 %v668_v0 }
  0x37   :  { %550 = vmatpush3.msra.mxu0 %v747_v10 }
  0x38   :  { %551 = vmatprep.subr.mxu0 %v668_v0 }
  0x39   :  { %552 = vmatpush3.msra.mxu0 %v755_v12 }
  0x3a   :  { %553 = vmatprep.subr.mxu0 %v668_v0 }
  0x3b   :  { %554 = vmatpush3.msra.mxu0 %v763_v14 }
  0x3c   :  { %555 = vmatprep.subr.mxu0 %v668_v0 }
  0x3d   :  { %556 = vmatpush3.msra.mxu0 %v142_v16 }
  0x3e   :  { %557 = vmatprep.subr.mxu0 %v668_v0 }
  0x3f   :  { %558 = vmatpush3.msra.mxu0 %v141_v18 }
  0x40   :  { %559 = vmatprep.subr.mxu0 %v668_v0 }
  0x41   :  { %560 = vmatpush3.msra.mxu0 %v140_v20 }
  0x42   :  { %561 = vmatprep.subr.mxu0 %v668_v0 }
  0x43   :  { %562 = vmatpush3.msra.mxu0 %v139_v22 }
  0x44   :  { %563 = vmatprep.subr.mxu0 %v668_v0 }
  0x45   :  { %564 = vmatpush3.msra.mxu0 %v138_v24 }
  0x46   :  { %565 = vmatprep.subr.mxu0 %v668_v0 }
  0x47   :  { %566 = vmatpush3.msra.mxu0 %v137_v26 }
  0x48   :  { %567 = vmatprep.subr.mxu0 %v668_v0 }
  0x49   :  { %568 = vmatpush3.msra.mxu0 %v136_v28 }
  0x4a   :  { %569 = vmatprep.subr.mxu0 %v668_v0 }
  0x4b   :  { %570 = vmatpush3.msra.mxu0 %v135_v31 }
  0x4c   :  { %571 = vmatprep.subr.mxu0 %v668_v0 }
  0x4d   :  { %572 = vmatpush3.msra.mxu0 %v134_v32 }
  0x4e   :  { %573 = vmatprep.subr.mxu0 %v668_v0 }
  0x4f   :  { %574 = vmatpush3.msra.mxu0 %v133_v33 }
  0xf0   :  { %v128_v35 = vpop.f32.mrf.mxu0 }
  0xf1   :  { %v129_v36 = vadd.f32 %v403_v34, %v128_v35 }
  0xf2   :  { %v507_v37 = vpop.f32.mrf.mxu0 }
  0xf3   :  { %v132_v38 = vmax.f32 %v129_v36, 0.0 }
  0xf5   :  { %541 = vmatmul.mubr.f32.vlgmr.msra.gmra.mxu1 %v132_v38 }
  0xf6   :  { %610 = vmatprep.mubr.msk.f32.mxu1 %vm669_vm0, %v668_v0  ;;  %579 = vmatpush3.msra.mxu1 %v308_v39 }
  0xf7   :  { %580 = vmatprep.subr.mxu1 %v668_v0 }
  0xf8   :  { %581 = vmatpush3.msra.mxu1 %v307_v40 }
  0xf9   :  { %582 = vmatprep.subr.mxu1 %v668_v0 }
  0xfa   :  { %583 = vmatpush3.msra.mxu1 %v306_v41 }
  0xfb   :  { %584 = vmatprep.subr.mxu1 %v668_v0 }
  0xfc   :  { %585 = vmatpush3.msra.mxu1 %v305_v42 }
  0xfd   :  { %586 = vmatprep.subr.mxu1 %v668_v0 }
  0xfe   :  { %587 = vmatpush3.msra.mxu1 %v304_v43 }
  0xff   :  { %588 = vmatprep.subr.mxu1 %v668_v0 }
 0x100   :  { %589 = vmatpush3.msra.mxu1 %v303_v44 }
 0x101   :  { %590 = vmatprep.subr.mxu1 %v668_v0 }
 0x102   :  { %591 = vmatpush3.msra.mxu1 %v302_v49 }
 0x103   :  { %592 = vmatprep.subr.mxu1 %v668_v0 }
 0x104   :  { %593 = vmatpush3.msra.mxu1 %v301_v50 }
 0x105   :  { %594 = vmatprep.subr.mxu1 %v668_v0 }
 0x106   :  { %595 = vmatpush3.msra.mxu1 %v300_v51 }
 0x107   :  { %596 = vmatprep.subr.mxu1 %v668_v0 }
 0x108   :  { %597 = vmatpush3.msra.mxu1 %v299_v52 }
 0x109   :  { %598 = vmatprep.subr.mxu1 %v668_v0 }
 0x10a   :  { %599 = vmatpush3.msra.mxu1 %v298_v53 }
 0x10b   :  { %600 = vmatprep.subr.mxu1 %v668_v0 }
 0x10c   :  { %601 = vmatpush3.msra.mxu1 %v297_v54 }
 0x10d   :  { %602 = vmatprep.subr.mxu1 %v668_v0 }
 0x10e   :  { %603 = vmatpush3.msra.mxu1 %v296_v55 }
 0x10f   :  { %604 = vmatprep.subr.mxu1 %v668_v0 }
 0x110   :  { %605 = vmatpush3.msra.mxu1 %v295_v56 }
 0x111   :  { %606 = vmatprep.subr.mxu1 %v668_v0 }
 0x112   :  { %607 = vmatpush3.msra.mxu1 %v294_v57 }
 0x113   :  { %608 = vmatprep.subr.mxu1 %v668_v0 }
 0x114   :  { %609 = vmatpush3.msra.mxu1 %v293_v58 }
 0x1b5   :  { %v215_v45 = vpop.f32.mrf.mxu1 }
 0x1b6   :  { %v219_v46 = vsub.f32 %v132_v38, %v215_v45 }
 0x1b7   :  { %v542_v47 = vpop.f32.mrf.mxu1 }
 0x1b8   :  { %v220_v48 = vmul.f32 %v219_v46, %v219_v46 }
 0x1ba   :  { %576 = vmatmul.mubr.f32.vlgmr.msra.gmra.mxu0 %v220_v48 }
 0x27a   :  { %v287_v59 = vpop.f32.mrf.mxu0 }
 0x27b   :  { %v288_v60 = vadd.f32 1e-12, %v287_v59 }
 0x27c   :  { %v577_v61 = vpop.f32.mrf.mxu0 }
 0x27d   :  { %619 = vrsqrt.f32 %v288_v60 }
 0x28a   :  { %v620_v62 = vpop.eup %619 }
 0x28b   :  { %v292_v63 = vmul.f32 %v620_v62, %v219_v46 }
 0x28d   :  { %611 = vmatmul.mubr.f32.vlgmr.msra.gmra.mxu1 %v292_v63 }
 0x34d   :  { %v382_v2 = vpop.f32.mrf.mxu1 }
 0x34e   :  { %v383_v3 = vadd.f32 %v404_v1, %v382_v2 }
 0x34f   :  { %v612_v4 = vpop.f32.mrf.mxu1 }
 0x350   :  { %387 = vst.msk [vmem:[#allocation5] sm:$0xff] %vm386_vm1, %v383_v3 }
 0x351   :  { %652 = shalt.err (!%p649_p9)
}
 0x352   :  { %397 = dma.vmem_to_hbm [thread:$0]  %s395_s18, 128, %s919_s6, [#allocation4]  }
 0x353   :  { %663 = dma.done.wait [#allocation4], 128  }
 0x354   :  { %664 = vsyncadd [#allocation4], 4294967168 }
 0x355   :  { %401 = vsyncpa [#allocation3], 1 }
 0x356   :  { %402 = vsyncpa [#allocation4], 1 }

</bundles_post_ra>
